<compile_context>
chip_gen: v7x
topology: tpu7x:2x2x1
jax: 0.10.0
libtpu: 0.0.40
codegen_flags: <defaults>
</compile_context>

<pallas_src>
from functools import partial

import numpy as np
import jax
import jax.numpy as jnp
from jax.experimental import pallas as pl
from jax.experimental.pallas import tpu as pltpu


def _next_pow2(n):
    p = 1
    while p < n:
        p *= 2
    return p


def _round_up(n, m):
    return -(-n // m) * m


def _traj_action_kernel(*refs, rotate, tpr, group, lanes,
                        lon_mid, lat_mid, lon_inv, lat_inv):
    """Processes one (block_rows, lanes) slab of interleaved [x, y, x, y, ...] coords.

    Each trajectory occupies `group` consecutive lanes and `group` divides `lanes`
    (tpr = lanes // group trajectories per slab row), so all lane mixing stays
    inside a trajectory's lane group.
    """
    if rotate:
        if tpr > 1:
            xy_ref, cs_ref, e_ref, out_ref = refs
        else:
            xy_ref, cs_ref, out_ref = refs
            e_ref = None
    else:
        xy_ref, out_ref = refs
        cs_ref = e_ref = None

    v = xy_ref[...]                                       # (rows, lanes) f32
    lane = jax.lax.broadcasted_iota(jnp.int32, v.shape, 1)
    is_x = jnp.bitwise_and(lane, 1) == 0                  # even lane -> x, odd lane -> y

    # Broadcast each trajectory's first (x0, y0) pair across its lane group.
    if tpr == 1:
        # One trajectory per row: plain lane-1 broadcast, zero XLU rolls.
        first = jnp.where(is_x, v[:, 0:1], v[:, 1:2])
    else:
        # log2(group/2) XLU rolls; rolls never cross a group where selected.
        first = v
        shift = 2
        while shift < group:
            rolled = pltpu.roll(first, shift=shift, axis=1)
            first = jnp.where(jnp.bitwise_and(lane, shift) == 0, first, rolled)
            shift *= 2
    d = v - first                                          # interleaved (dx, dy)

    if rotate:
        # Pair swap: d_sw[l] = d[l ^ 1]  (dy at even lanes, dx at odd lanes).
        up = pltpu.roll(d, shift=lanes - 1, axis=1)        # d[l + 1]
        dn = pltpu.roll(d, shift=1, axis=1)                # d[l - 1]
        d_sw = jnp.where(is_x, up, dn)

        if tpr > 1:
            # Expand compact per-trajectory [cos | sin] to per-lane coefficients with
            # one small MXU matmul (MXU is idle in this kernel).  The normalization
            # scale and the -sin/+sin sign pattern are folded into the constant E.
            ab = jnp.dot(cs_ref[...], e_ref[...],
                         preferred_element_type=jnp.float32)
            a_coef = ab[:, :lanes]                         # cos * scale  (every lane)
            b_coef = ab[:, lanes:]                         # -sin*scale at x lanes, +sin*scale at y lanes
        else:
            c = cs_ref[:, 0:1]                             # cos(-heading0), (rows, 1)
            s = cs_ref[:, 1:2]                             # sin(-heading0)
            if lon_inv == lat_inv:
                a_coef = c * lon_inv
                b_coef = jnp.where(is_x, -s, s) * lon_inv
            else:
                scale = jnp.where(is_x, lon_inv, lat_inv)
                a_coef = c * scale
                b_coef = jnp.where(is_x, -s, s) * scale

        # x' = (c*dx - s*dy)*lon_inv  (even lanes);  y' = (s*dx + c*dy)*lat_inv  (odd).
        out = a_coef * d + b_coef * d_sw
        if lon_mid != 0.0 or lat_mid != 0.0:
            out = out - jnp.where(is_x, lon_mid * lon_inv, lat_mid * lat_inv)
    else:
        if lon_mid != 0.0 or lat_mid != 0.0:
            d = d - jnp.where(is_x, lon_mid, lat_mid)
        if lon_inv == lat_inv:
            out = d * lon_inv                              # scalar multiply (default ranges)
        else:
            out = d * jnp.where(is_x, lon_inv, lat_inv)

    out_ref[...] = out.astype(out_ref.dtype)


def traj_action_encode_points(points, heading0=None, *,
                              lon_range=(-80.0, 80.0), lat_range=(-80.0, 80.0),
                              rotate=False, block_rows=1024, out_dtype=jnp.float32):
    """Batched TrajActionEncoder forward on interleaved trajectory points.

    points   : (B, T, 2) or (T, 2) absolute (x, y) coordinates.  The row-major flatten
               of the last two dims is exactly torch's stack([dx, dy], -1).flatten()
               ordering, so for "nice" shapes the kernel input is a zero-copy view.
    heading0 : (B,) (or scalar for a single trajectory) initial headings; only used
               when rotate=True.
    Returns (B, 2T) -- or (2T,) for unbatched input -- normalized relative coords.
    """
    points = jnp.asarray(points, jnp.float32)
    squeeze = points.ndim == 2
    if squeeze:
        points = points[None]
    if points.ndim != 3 or points.shape[-1] != 2:
        raise ValueError("points must have shape (B, T, 2) or (T, 2)")
    B, T, _ = points.shape
    F = 2 * T

    # Per-trajectory lane group: next power of two (a divisor of 128) for short
    # trajectories, next multiple of 128 for long ones -> lane-dense blocks.
    group = _next_pow2(F) if F <= 128 else _round_up(F, 128)
    lanes = max(128, group)
    tpr = lanes // group                                   # trajectories per slab row

    lon_mid = (lon_range[0] + lon_range[1]) * 0.5
    lon_half = (lon_range[1] - lon_range[0]) * 0.5
    lat_mid = (lat_range[0] + lat_range[1]) * 0.5
    lat_half = (lat_range[1] - lat_range[0]) * 0.5
    lon_inv = 1.0 / lon_half
    lat_inv = 1.0 / lat_half

    # Fast path: no per-trajectory lane padding and no batch padding -> the slab is a
    # metadata-only reshape of `points`, and the output reshape back is also free.
    fast = (group == F) and ((B * F) % lanes == 0)
    if fast:
        B_pad = B
        rows = (B * F) // lanes
        xy = points.reshape(rows, lanes)
    else:
        B_pad = _round_up(B, tpr * 8)                      # >= 8 sublanes, whole rows
        rows = B_pad // tpr
        xy = points.reshape(B, F)
        xy = jnp.pad(xy, ((0, B_pad - B), (0, group - F)))
        xy = xy.reshape(rows, lanes)

    # Block size: <= ~1 MiB per block (safe under v5e/v7x default scoped VMEM with
    # double buffering + temporaries), and >= 2 grid steps when possible so the
    # "parallel" batch axis shards across v7x's two TensorCores.
    cap_rows = max(8, ((1 << 20) // (lanes * 4)) // 8 * 8)
    if rows <= 8:
        br = rows
    else:
        br = max(8, min(int(block_rows), cap_rows))
        br = min(br, _round_up(-(-rows // 2), 8))
        br = max(8, (br // 8) * 8)
    grid = (-(-rows // br),)                               # edge blocks clamped by Pallas

    blk = pl.BlockSpec((br, lanes), lambda i: (i, 0))
    in_specs = [blk]
    args = [xy]

    if rotate:
        if heading0 is None:
            raise ValueError("rotate=True requires heading0")
        h0 = jnp.asarray(heading0, jnp.float32).reshape(-1)
        if h0.shape[0] == 1 and B > 1:
            h0 = jnp.broadcast_to(h0, (B,))
        if h0.shape[0] != B:
            raise ValueError("heading0 must provide one initial heading per trajectory")
        theta = -h0                                        # cvt.Rotate(-heading[0])
        # Trig on the compact per-trajectory values only (B elements, not a full slab).
        c = jnp.cos(theta)
        s = jnp.sin(theta)
        if B_pad != B:
            c = jnp.pad(c, (0, B_pad - B))
            s = jnp.pad(s, (0, B_pad - B))
        if tpr == 1:
            cs = jnp.stack([c, s], axis=-1)                                    # (rows, 2)
        else:
            cs = jnp.concatenate([c.reshape(rows, tpr), s.reshape(rows, tpr)], axis=-1)
        in_specs.append(pl.BlockSpec((br, cs.shape[-1]), lambda i: (i, 0)))
        args.append(cs)

        if tpr > 1:
            # Constant expansion matrix:  cs (rows, 2*tpr) @ E (2*tpr, 2*lanes)
            #   -> [cos*scale | -/+sin*scale] per lane; scale and sign folded in.
            l = np.arange(lanes)
            g = l // group
            even = (l % 2) == 0
            E = np.zeros((2 * tpr, 2 * lanes), np.float32)
            E[g, l] = np.where(even, lon_inv, lat_inv).astype(np.float32)
            E[tpr + g, lanes + l] = np.where(even, -lon_inv, lat_inv).astype(np.float32)
            in_specs.append(pl.BlockSpec((2 * tpr, 2 * lanes), lambda i: (0, 0)))
            args.append(jnp.asarray(E))

    kernel = partial(_traj_action_kernel, rotate=rotate, tpr=tpr, group=group,
                     lanes=lanes, lon_mid=float(lon_mid), lat_mid=float(lat_mid),
                     lon_inv=float(lon_inv), lat_inv=float(lat_inv))

    out_slab = pl.pallas_call(
        kernel,
        out_shape=jax.ShapeDtypeStruct((rows, lanes), out_dtype),
        grid=grid,
        in_specs=in_specs,
        out_specs=pl.BlockSpec((br, lanes), lambda i: (i, 0)),
        compiler_params=pltpu.CompilerParams(dimension_semantics=("parallel",)),
    )(*args)

    if fast:
        out = out_slab.reshape(B, F)                       # metadata-only
    else:
        out = out_slab.reshape(B_pad, group)[:B, :F]       # only when shape was padded
    return out.reshape(-1) if squeeze else out


def traj_action_encode(x, y, heading=None, *,
                       lon_range=(-80.0, 80.0), lat_range=(-80.0, 80.0),
                       rotate=False, **kwargs):
    """Convenience wrapper matching the torch module's separate x / y / heading inputs.

    NOTE: packing x/y into interleaved points costs one extra HBM pass over the inputs;
    callers that already hold (..., T, 2) points should use traj_action_encode_points.
    """
    x = jnp.asarray(x, jnp.float32)
    y = jnp.asarray(y, jnp.float32)
    if x.shape != y.shape:
        raise ValueError("x and y must have the same shape")
    points = jnp.stack([x, y], axis=-1)
    h0 = None
    if rotate:
        if heading is None:
            raise ValueError("rotate=True requires heading")
        h = jnp.asarray(heading, jnp.float32)
        if x.ndim == 1:                                    # single trajectory
            h0 = h.reshape(-1)[0]
        elif h.ndim == 2:
            h0 = h[:, 0]
        elif h.ndim == 1 and h.shape[0] == x.shape[0]:
            h0 = h                                         # already per-trajectory heading[0]
        elif h.ndim == 0:
            h0 = jnp.broadcast_to(h, (x.shape[0],))
        else:
            raise ValueError("for batched x, heading must be (B, T), (B,) or scalar")
    return traj_action_encode_points(points, h0, lon_range=lon_range,
                                     lat_range=lat_range, rotate=rotate, **kwargs)


def _reference(x, y, heading, lon_range, lat_range, rotate):
    x = jnp.asarray(x, jnp.float32)
    y = jnp.asarray(y, jnp.float32)
    single = x.ndim == 1
    if single:
        x, y = x[None], y[None]
    dx = x - x[:, :1]
    dy = y - y[:, :1]
    if rotate:
        h = jnp.asarray(heading, jnp.float32)
        if single:
            h0 = h.reshape(-1)[:1]
        elif h.ndim == 2:
            h0 = h[:, 0]
        else:
            h0 = h.reshape(-1)
        th = -h0[:, None]
        c, s = jnp.cos(th), jnp.sin(th)
        dx, dy = c * dx - s * dy, s * dx + c * dy
    lon_mid = (lon_range[0] + lon_range[1]) * 0.5
    lon_half = (lon_range[1] - lon_range[0]) * 0.5
    lat_mid = (lat_range[0] + lat_range[1]) * 0.5
    lat_half = (lat_range[1] - lat_range[0]) * 0.5
    out = jnp.stack([(dx - lon_mid) / lon_half, (dy - lat_mid) / lat_half], axis=-1)
    out = out.reshape(x.shape[0], -1)
    return out.reshape(-1) if single else out


if __name__ == "__main__":
    B, T = 256, 8
    key = jax.random.PRNGKey(0)
    kx, ky, kh = jax.random.split(key, 3)
    x = jax.random.uniform(kx, (B, T), jnp.float32, minval=-50.0, maxval=50.0)
    y = jax.random.uniform(ky, (B, T), jnp.float32, minval=-50.0, maxval=50.0)
    heading = jax.random.uniform(kh, (B, T), jnp.float32, minval=-jnp.pi, maxval=jnp.pi)
    points = jnp.stack([x, y], axis=-1)                    # (B, T, 2) natural trajectory layout
    h0 = heading[:, 0]

    lon_range = (-80.0, 80.0)
    lat_range = (-80.0, 80.0)

    ok = True

    # fast (zero-copy) path, with and without rotation
    for rotate in (False, True):
        out = jax.block_until_ready(
            traj_action_encode_points(points, h0 if rotate else None,
                                      lon_range=lon_range, lat_range=lat_range,
                                      rotate=rotate))
        ref = _reference(x, y, heading, lon_range, lat_range, rotate)
        ok &= out.shape == (B, 2 * T)
        ok &= bool(jnp.allclose(out, ref, atol=1e-5, rtol=1e-5))

    # separate-x/y convenience API (matches the torch module's inputs)
    out_xy = jax.block_until_ready(
        traj_action_encode(x, y, heading, lon_range=lon_range, lat_range=lat_range,
                           rotate=True))
    ok &= bool(jnp.allclose(out_xy, _reference(x, y, heading, lon_range, lat_range, True),
                            atol=1e-5, rtol=1e-5))

    # fast path whose row count does not divide the block size (exercises edge clamping)
    out200 = jax.block_until_ready(
        traj_action_encode_points(points[:200], h0[:200], lon_range=lon_range,
                                  lat_range=lat_range, rotate=True))
    ok &= bool(jnp.allclose(out200, _reference(x[:200], y[:200], heading[:200],
                                               lon_range, lat_range, True),
                            atol=1e-5, rtol=1e-5))

    # ragged batch (exercises the padded slow path)
    outb = jax.block_until_ready(
        traj_action_encode_points(points[:37], h0[:37], lon_range=lon_range,
                                  lat_range=lat_range, rotate=True))
    ok &= bool(jnp.allclose(outb, _reference(x[:37], y[:37], heading[:37],
                                             lon_range, lat_range, True),
                            atol=1e-5, rtol=1e-5))

    # single-trajectory API (the original torch forward signature)
    out1 = jax.block_until_ready(
        traj_action_encode(x[0], y[0], heading[0], lon_range=lon_range,
                           lat_range=lat_range, rotate=True))
    ok &= out1.shape == (2 * T,)
    ok &= bool(jnp.allclose(out1, _reference(x[0], y[0], heading[0],
                                             lon_range, lat_range, True),
                            atol=1e-5, rtol=1e-5))

    print("KERNEL_OK" if ok else "KERNEL_MISMATCH")
</pallas_src>

<mosaic_0001>
module attributes {stable_mosaic.version = 11 : i64} {
  func.func @_traj_action_kernel(%arg0: i32, %arg1: memref<16x128xf32, #tpu.memory_space<vmem>>, %arg2: memref<16x128xf32, #tpu.memory_space<vmem>>) attributes {dimension_semantics = [#tpu.dimension_semantics<parallel>], iteration_bounds = array<i64: 2>, scalar_prefetch = 0 : i64, scratch_operands = 0 : i64, tpu.core_type = #tpu.core_type<tc>, window_params = [{transform_indices = @transform_0, window_bounds = array<i64: 16, 128>}, {transform_indices = @transform_1, window_bounds = array<i64: 16, 128>}]} {
    %c0 = arith.constant 0 : index
    %c0_0 = arith.constant 0 : index
    %0 = vector.load %arg1[%c0, %c0_0] : memref<16x128xf32, #tpu.memory_space<vmem>>, vector<16x128xf32>
    %1 = tpu.iota {dimensions = array<i32: 1>} : vector<16x128xi32>
    %c2_i32 = arith.constant 2 : i32
    %2 = tpu.dynamic_rotate %0 by %c2_i32 dim 1 : vector<16x128xf32>, i32 -> vector<16x128xf32>
    %c2_i32_1 = arith.constant 2 : i32
    %3 = vector.broadcast %c2_i32_1 : i32 to vector<16x128xi32>
    %4 = arith.andi %1, %3 : vector<16x128xi32>
    %c0_i32 = arith.constant 0 : i32
    %5 = vector.broadcast %c0_i32 : i32 to vector<16x128xi32>
    %6 = arith.cmpi eq, %4, %5 : vector<16x128xi32>
    %7 = arith.select %6, %0, %2 : vector<16x128xi1>, vector<16x128xf32>
    %c4_i32 = arith.constant 4 : i32
    %8 = tpu.dynamic_rotate %7 by %c4_i32 dim 1 : vector<16x128xf32>, i32 -> vector<16x128xf32>
    %c4_i32_2 = arith.constant 4 : i32
    %9 = vector.broadcast %c4_i32_2 : i32 to vector<16x128xi32>
    %10 = arith.andi %1, %9 : vector<16x128xi32>
    %c0_i32_3 = arith.constant 0 : i32
    %11 = vector.broadcast %c0_i32_3 : i32 to vector<16x128xi32>
    %12 = arith.cmpi eq, %10, %11 : vector<16x128xi32>
    %13 = arith.select %12, %7, %8 : vector<16x128xi1>, vector<16x128xf32>
    %c8_i32 = arith.constant 8 : i32
    %14 = tpu.dynamic_rotate %13 by %c8_i32 dim 1 : vector<16x128xf32>, i32 -> vector<16x128xf32>
    %c8_i32_4 = arith.constant 8 : i32
    %15 = vector.broadcast %c8_i32_4 : i32 to vector<16x128xi32>
    %16 = arith.andi %1, %15 : vector<16x128xi32>
    %c0_i32_5 = arith.constant 0 : i32
    %17 = vector.broadcast %c0_i32_5 : i32 to vector<16x128xi32>
    %18 = arith.cmpi eq, %16, %17 : vector<16x128xi32>
    %19 = arith.select %18, %13, %14 : vector<16x128xi1>, vector<16x128xf32>
    %20 = arith.subf %0, %19 : vector<16x128xf32>
    %cst = arith.constant 1.250000e-02 : f32
    %21 = vector.broadcast %cst : f32 to vector<16x128xf32>
    %22 = arith.mulf %20, %21 : vector<16x128xf32>
    %c0_6 = arith.constant 0 : index
    %c0_7 = arith.constant 0 : index
    %23 = vector.load %arg2[%c0_6, %c0_7] : memref<16x128xf32, #tpu.memory_space<vmem>>, vector<16x128xf32>
    tpu.vector_store %arg2[%c0_6, %c0_7], %22 {strides = array<i32>} : memref<16x128xf32, #tpu.memory_space<vmem>>, vector<16x128xf32>,
    return
  }
  func.func @transform_0(%arg0: i32) -> (i32, i32) {
    %c0_i32 = arith.constant 0 : i32
    %c0_i32_0 = arith.constant 0 : i32
    return %arg0, %c0_i32 : i32, i32
  }
  func.func @transform_1(%arg0: i32) -> (i32, i32) {
    %c0_i32 = arith.constant 0 : i32
    %c0_i32_0 = arith.constant 0 : i32
    return %arg0, %c0_i32 : i32, i32
  }
}

</mosaic_0001>

<bundles_post_ra>
// kernel: tpu_custom_call.1
= control target key start
LH: loop header
LB: loop body
LE: loop exit
PB: predicated region body
PF: predicated region fallthrough
CT: control target
= control target key end

     0   :  { %6 = vsyncpa [#allocation3], 0  ;;  %s611_s0 = inlined_call_operand.hbm [shape: f32[32,128], index: 0, kind: input, shape index: {}]   ;;  %s612_s1 = inlined_call_operand.hbm [shape: f32[32,128], index: 1, kind: output, shape index: {}]  }
   0x1   :  { %8 = vsyncpa [#allocation3 + $0x1], 0 }
   0x2   :  { %9 = vsyncpa [#allocation4], 0 }
   0x3   :  { %11 = vsyncpa [#allocation4 + $0x1], 0  ;;  %s442_s6 = smov 0   ;;  %s444_s7 = smov 0  }
   0x4   :  { %s446_s8 = smov 0   ;;  %s448_s9 = smov 0  }
   0x5 LB: > { %s463_s10 = sadd.s32 4294967295, %s422_s9   ;;  %s258_s11 = sadd.s32 4294967294, %s422_s9   ;;  %s422_s9 = sphi %s448_s9, %s625_s9   ;;  %s418_s8 = sphi %s446_s8, %s624_s8   ;;  %s414_s7 = sphi %s444_s7, %s623_s7   ;;  %s410_s6 = sphi %s442_s6, %s622_s6  }
   0x6   : > { %s467_s12 = sadd.s32 1, %s422_s9   ;;  %s24_s13 = sadd.s32 1, %s418_s8 }
   0x7   : > { %s21_s14 = ssub.s32 %s422_s9, %s467_s12  ;;  %p31_p0 = scmp.ne.s32.totalorder %s418_s8, %s414_s7 }
   0x8   : > { %p22_p1 = scmp.eq.s32.totalorder %s21_s14, 0  ;;  %p32_p2 = scmp.eq.s32.totalorder %s422_s9, 0 }
   0x9   : > { %p37_p3 = scmp.ne.s32.totalorder %s414_s7, %s410_s6  ;;  %p38_p4 = scmp.eq.s32.totalorder %s463_s10, 0 }
   0xa   : > { %s479_s15 = scalar_select %p22_p1, %s418_s8, %s24_s13  }
   0xb   : > { %p481_p5 = por %p32_p2, %p31_p0  ;;  %p485_p6 = por %p38_p4, %p37_p3 }
   0xc   : > { %p61_p7 = scmp.eq.s32.totalorder %s463_s10, 1  ;;  %p67_p8 = scmp.eq.s32.totalorder %s258_s11, 1 }
   0xd   : > { %p286_p10 = scmp.lt.s32.totalorder %s422_s9, 2  ;;  %s87_s20 = sand.u32 1, %s418_s8  }
   0xe   : > { %p492_p11 = por %p61_p7, %p31_p0  ;;  %p496_p12 = por %p67_p8, %p37_p3 }
   0xf   : > { %s272_s21 = sshll.u32 %s422_s9, 8  ;;  %s261_s22 = sshll.u32 %s87_s20, 4 }
  0x10   : > { %s616_s18 = scalar_select %p492_p11, 1, 0 }
  0x11   : > { %s617_s19 = scalar_select %p496_p12, 1, 0 }
  0x12   : > { %s505_s25 = scalar_lea.hbm %s611_s0, %s272_s21  ;;  %s91_s26 = scalar_lea.vmem [#allocation2], %s261_s22 }
  0x13   : > { %s98_s27 = sshll.u32 %s91_s26, 4  ;;  %p509_p13 = pnand %p286_p10, %p481_p5  ;;  %s513_s27 = int_to_ptr.vmem [resolvable:$true] %s98_s27 }
  0x14   : > { %s515_s29 = scalar_lea.sflag [#allocation3], %s87_s20  ;;  %s326_s30 = scalar_lea.hbm %s505_s25, 256 }
  0x15   : > { %p327_p0 = scmp.ne.s32.totalorder %s505_s25, %s326_s30  ;;  %p328_p1 = pneg %p509_p13 }
  0x16   : > { %s331_s4 = scalar_lea.hbm %s611_s0, 512  ;;  %p332_p4 = scmp.lt.u32.totalorder %s505_s25, %s611_s0 }
  0x17   : > { %p329_p2 = pnand %p328_p1, %p327_p0  ;;  %p333_p5 = scmp.lt.u32.totalorder %s331_s4, %s326_s30 }
  0x18   : > { %p335_p8 = scmp.lt.u32.totalorder %s326_s30, %s505_s25 }
  0x19   : > { %p330_p3 = pneg %p329_p2  ;;  %p334_p7 = por %p333_p5, %p332_p4 }
  0x1b   : > { %p336_p10 = por %p335_p8, %p334_p7 }
  0x1d   : > { %p337_p9 = pnand %p336_p10, %p330_p3 }
  0x1f   : > { %340 = shalt.err (!%p337_p9)
}
  0x20   : > { %s341_s13 = scalar_lea.vmem %s513_s27, 256  ;;  %s424_s14 = smov [#allocation2]  }
  0x21   : > { %p342_p0 = scmp.ne.s32.totalorder %s513_s27, %s341_s13  ;;  %s346_s16 = sshll.u32 %s424_s14, 4  ;;  %s347_s16 = int_to_ptr.vmem [resolvable:$false] %s346_s16 }
  0x22   : > { %s348_s20 = scalar_lea.vmem %s347_s16, 512  ;;  %p349_p11 = scmp.lt.s32.totalorder %s513_s27, %s347_s16 }
  0x23   : > { %p344_p2 = pnand %p342_p0, %p328_p1  ;;  %p350_p4 = scmp.lt.s32.totalorder %s348_s20, %s341_s13 }
  0x25   : > { %p345_p12 = pneg %p344_p2  ;;  %p351_p5 = por %p350_p4, %p349_p11 }
  0x27   : > { %p352_p7 = pnand %p351_p5, %p345_p12 }
  0x29   : > { %355 = shalt.err (!%p352_p7)
}
  0x2a   : > { %s425_s21 = smov 128   ;;  %s426_s22 = smov 8  }
  0x2b   : > { %281 = dma.hbm_to_vmem [thread:$0]  (!%p509_p13), %s505_s25, 256, %s513_s27, %s515_s29, %s425_s21, %s425_s21, %s426_s22  }
  0x2c   : > { %p264_p9 = scmp.ge.s32.totalorder %s422_s9, 1  ;;  %p106_p1 = scmp.lt.s32.totalorder %s422_s9, 3 }
  0x2e   : > { %p107_p3 = pnand %p264_p9, %p106_p1 }
  0x2f   : > { %s546_s23 = sand.u32 (!%p107_p3), 1, %s414_s7  }
  0x30   : > { %110 = sbr.rel (%p107_p3) target bundleno = 428 (0x1ac), region = 24  ;;  %s265_s24 = sshll.u32 (!%p107_p3), %s546_s23, 4 }
  0x31   : > { %s113_s26 = scalar_lea.sflag (!%p107_p3), [#allocation3], %s546_s23  ;;  %s116_s30 = scalar_lea.vmem (!%p107_p3), [#allocation2], %s265_s24 }
  0x37   : > { %401 = dma.done.wait (%p485_p6), %s113_s26, 256  }
  0x38   : > { %403 = vsyncadd (%p485_p6), %s113_s26, 4294967040  ;;  %v137_v0 = vld [vmem:[%s116_s30] sm:$0xff]  ;;  %s427_s25 = smov 2   ;;  %v138_v1 = vld [vmem:[%s116_s30 + $0x8] sm:$0xff]  ;;  %v139_v2 = vlaneseq  ;;  %s428_s27 = smov 4  }
  0x39   : > { %141 = vrot.lane.b32.xlu0 %v137_v0, %s427_s25  ;;  %s429_s17 = smov 8   ;;  %s134_s28 = scalar_lea.vmem [#allocation5], %s265_s24 }
  0x3a   : > { %v140_v3 = vand.u32 127, %v139_v2  ;;  %s185_s29 = sshll.u32 %s134_s28, 4  ;;  %s273_s2 = sshll.u32 %s463_s10, 8  ;;  %s561_s29 = int_to_ptr.vmem [resolvable:$true] %s185_s29 }
  0x3b   : > { %s566_s5 = scalar_lea.hbm %s612_s1, %s273_s2  ;;  %s172_s11 = scalar_lea.sflag [#allocation4], %s546_s23 }
  0x3c   : > { %v145_v4 = vand.u32 2, %v140_v3  ;;  %v153_v9 = vand.u32 4, %v140_v3  ;;  %v161_v14 = vand.u32 8, %v140_v3  ;;  %s356_s13 = scalar_lea.vmem %s561_s29, 256  ;;  %p619_p11 = scmp.ne.s32.totalorder %s616_s18, 0 }
  0x3d   : > { %143 = vrot.lane.b32.xlu0 %v138_v1, %s427_s25  ;;  %p357_p6 = scmp.ne.s32.totalorder %s561_s29, %s356_s13  ;;  %s430_s10 = smov [#allocation5]  }
  0x3e   : > { %vm146_vm0 = vcmp.eq.s32.totalorder %v145_v4, 0  ;;  %vm154_vm1 = vcmp.eq.s32.totalorder %v153_v9, 0  ;;  %vm162_vm2 = vcmp.eq.s32.totalorder %v161_v14, 0  ;;  %s360_s14 = sshll.u32 %s430_s10, 4  ;;  %s361_s14 = int_to_ptr.vmem [resolvable:$false] %s360_s14 }
  0x3f   : > { %p358_p12 = pnand %p357_p6, %p619_p11  ;;  %s362_s16 = scalar_lea.vmem %s361_s14, 512 }
  0x40   : > { %p363_p8 = scmp.lt.s32.totalorder %s561_s29, %s361_s14  ;;  %p364_p10 = scmp.lt.s32.totalorder %s362_s16, %s356_s13 }
  0x41   : > { %p359_p13 = pneg %p358_p12 }
  0x42   : > { %p365_p0 = por %p364_p10, %p363_p8 }
  0x44   : > { %p366_p2 = pnand %p365_p0, %p359_p13 }
  0xab   : > { %v142_v5 = vpop.permute.xlu0 %141 }
  0xac   : > { %v147_v6 = vsel %vm146_vm0, %v137_v0, %v142_v5 }
  0xad   : > { %149 = vrot.lane.b32.xlu1 %v147_v6, %s428_s27 }
  0xaf   : > { %v144_v7 = vpop.permute.xlu0 %143 }
  0xb0   : > { %v148_v8 = vsel %vm146_vm0, %v138_v1, %v144_v7 }
  0xb1   : > { %151 = vrot.lane.b32.xlu1 %v148_v8, %s428_s27 }
 0x11f   : > { %v150_v10 = vpop.permute.xlu1 %149 }
 0x120   : > { %v155_v11 = vsel %vm154_vm1, %v147_v6, %v150_v10 }
 0x121   : > { %157 = vrot.lane.b32.xlu0 %v155_v11, %s429_s17 }
 0x123   : > { %v152_v12 = vpop.permute.xlu1 %151 }
 0x124   : > { %v156_v13 = vsel %vm154_vm1, %v148_v8, %v152_v12 }
 0x125   : > { %159 = vrot.lane.b32.xlu1 %v156_v13, %s429_s17 }
 0x193   : > { %v158_v15 = vpop.permute.xlu0 %157 }
 0x194   : > { %v163_v16 = vsel %vm162_vm2, %v155_v11, %v158_v15 }
 0x195   : > { %v165_v17 = vsub.f32 %v137_v0, %v163_v16 }
 0x197   : > { %v167_v18 = vmul.f32 0.0125, %v165_v17  ;;  %v160_v19 = vpop.permute.xlu1 %159 }
 0x198   : > { %v164_v20 = vsel %vm162_vm2, %v156_v13, %v160_v19 }
 0x199   : > { %169 = vst [vmem:[%s134_s28] sm:$0xff] %v167_v18  ;;  %v166_v21 = vsub.f32 %v138_v1, %v164_v20 }
 0x19b   : > { %v168_v22 = vmul.f32 0.0125, %v166_v21 }
 0x19d   : > { %170 = vst [vmem:[%s134_s28 + $0x8] sm:$0xff] %v168_v22 }
 0x19e   : > { %369 = shalt.err (!%p366_p2)
}
 0x19f   : > { %s370_s20 = scalar_lea.hbm %s566_s5, 256  ;;  %s374_s24 = scalar_lea.hbm %s612_s1, 512 }
 0x1a0   : > { %p371_p4 = scmp.ne.s32.totalorder %s566_s5, %s370_s20  ;;  %p375_p9 = scmp.lt.u32.totalorder %s566_s5, %s612_s1 }
 0x1a1   : > { %p376_p1 = scmp.lt.u32.totalorder %s374_s24, %s370_s20  ;;  %p378_p6 = scmp.lt.u32.totalorder %s370_s20, %s566_s5 }
 0x1a2   : > { %p372_p5 = pnand %p371_p4, %p619_p11 }
 0x1a3   : > { %p377_p3 = por %p376_p1, %p375_p9 }
 0x1a4   : > { %p373_p7 = pneg %p372_p5 }
 0x1a5   : > { %p379_p12 = por %p378_p6, %p377_p3 }
 0x1a7   : > { %p380_p13 = pnand %p379_p12, %p373_p7 }
 0x1a9   : > { %383 = shalt.err (!%p380_p13)
}
 0x1aa   : > { %s431_s25 = smov 128  }
 0x1ab   : > { %276 = dma.vmem_to_hbm [thread:$0]  (%p619_p11), %s561_s29, 256, %s566_s5, %s172_s11, %s431_s25, %s431_s25, %s429_s17  }
 0x1ac PF: > { %s200_s27 = sand.u32 1, %s410_s6   ;;  %p620_p8 = scmp.ne.s32.totalorder %s617_s19, 0 }
 0x1ad   : > { %p621_p10 = scmp.ge.s32.totalorder %s422_s9, 2  ;;  %s201_s28 = scalar_lea.sflag [#allocation4], %s200_s27 }
 0x1af   : > { %p283_p0 = pnand %p621_p10, %p620_p8 }
 0x1b1   : > { %405 = dma.done.wait (!%p283_p0), %s201_s28, 256  }
 0x1b2   : > { %407 = vsyncadd (!%p283_p0), %s201_s28, 4294967040  ;;  %p14_p2 = scmp.ge.s32.totalorder %s467_s12, 4   ;;  %s622_s6 = smov %s414_s7 }
 0x1b3   : > { %s623_s7 = smov %s418_s8  ;;  %s624_s8 = smov %s479_s15 }
 0x1b4   : > { %s625_s9 = smov %s467_s12  ;;  %16 = sbr.rel (!%p14_p2) target bundleno = 5 (0x5), region = 69 }
 0x1bb   :  { %206 = vsyncpa [#allocation3], 1 }
 0x1bc   :  { %208 = vsyncpa [#allocation3 + $0x1], 1 }
 0x1bd   :  { %209 = vsyncpa [#allocation4], 1 }
 0x1be   :  { %211 = vsyncpa [#allocation4 + $0x1], 1 }

</bundles_post_ra>
